<compile_context>
chip_gen: v5e
topology: v5e:2x2
jax: 0.10.0
libtpu: 0.0.40
codegen_flags: <defaults>
</compile_context>

<pallas_src>
import jax
import jax.numpy as jnp
from jax.experimental import pallas as pl
from jax.experimental.pallas import tpu as pltpu

# ---- problem sizes (small, consistent with the module) ----------------------
N      = 2          # batch
CIN    = 4          # input channels  (see NOTE above)
COUT   = 16         # output channels
H = W  = 16         # spatial
KH = KW = 2         # kernel size
G      = 2          # groups
CIN_G  = CIN // G   # = 2
COUT_G = COUT // G  # = 8
OH, OW = H - KH + 1, W - KW + 1   # stride 1, no padding -> 15, 15

HW        = H * W                 # 256 flattened spatial positions
CIN_PAD   = 8                     # pad input channels 4 -> 8 (full sublane tile)
N_TAPS    = KH * KW               # 4
K_DIM     = N_TAPS * CIN_PAD      # 32  (stacked contraction axis)
NHW       = N * HW                # 512 (batch folded into lanes)
MAX_SHIFT = (KH - 1) * W + (KW - 1)   # 17: largest flattened tap offset

# Static safety check: the spatial tail pad used for im2col must cover the
# largest tap shift so no slice reads across an image boundary.
assert MAX_SHIFT < HW, "tap shift must stay within one image's spatial slab"


def _grouped_conv_kernel(x_ref, w_ref, o_ref):
    """Entire grouped conv as one MXU matmul.

    x_ref : (K_DIM, NHW)  f32  im2col input: rows = (tap, padded cin),
                               cols = (batch, flattened spatial).
    w_ref : (COUT, K_DIM) f32  stacked, block-diagonal-over-groups weight.
    o_ref : (COUT, NHW)   f32  valid at q = oh*W + ow for oh < OH, ow < OW.
    """
    o_ref[...] = jnp.dot(w_ref[...], x_ref[...],
                         preferred_element_type=jnp.float32)


def prepare_weight(w_oihw):
    """One-time weight prep (hoisted out of the per-forward path).

    w_oihw: (COUT, CIN_G, KH, KW) PyTorch Conv2d weight layout.
    Returns (COUT, K_DIM) with
      w_stk[g*COUT_G+oc, t*CIN_PAD + g*CIN_G + ic] = w_oihw[g*COUT_G+oc, ic, kh, kw]
    (t = kh*KW + kw) and zeros for cross-group / padded channels.
    """
    w_full = jnp.zeros((N_TAPS, COUT, CIN_PAD), w_oihw.dtype)
    w_g = w_oihw.reshape(G, COUT_G, CIN_G, KH, KW)
    for g in range(G):
        # (COUT_G, CIN_G, KH, KW) -> (KH, KW, COUT_G, CIN_G) -> (N_TAPS, COUT_G, CIN_G)
        wt = jnp.transpose(w_g[g], (2, 3, 0, 1)).reshape(N_TAPS, COUT_G, CIN_G)
        w_full = w_full.at[:, g * COUT_G:(g + 1) * COUT_G,
                           g * CIN_G:(g + 1) * CIN_G].set(wt)
    # Stack taps along the contraction axis: (N_TAPS, COUT, CIN_PAD) -> (COUT, K_DIM)
    return jnp.transpose(w_full, (1, 0, 2)).reshape(COUT, K_DIM)


@jax.jit
def grouped_conv2d(x_nchw, w_stk):
    """x_nchw: (N, CIN, H, W) f32; w_stk: (COUT, K_DIM) f32 (from prepare_weight).

    Returns (N, COUT, OH, OW) f32, matching PyTorch Conv2d(groups=G, bias=False).
    """
    # -- im2col in the fused wrapper: pre-shift the tap windows so every
    #    in-kernel load is aligned (lane offsets 1/16/17 never reach the kernel).
    x_flat = x_nchw.reshape(N, CIN, HW)
    x_pad = jnp.pad(x_flat, ((0, 0), (0, CIN_PAD - CIN), (0, MAX_SHIFT)))
    taps = []
    for kh in range(KH):
        for kw in range(KW):
            s = kh * W + kw                       # static shift of this tap
            # window[n, c, oh*W+ow] == x[n, c, oh+kh, ow+kw] for every valid
            # output position; positions with ow==W-1 or oh==H-1 hold garbage
            # that the final crop removes.
            taps.append(x_pad[:, :, s:s + HW])    # (N, CIN_PAD, HW)
    x_col = jnp.stack(taps, axis=0)               # (N_TAPS, N, CIN_PAD, HW)
    x_col = jnp.transpose(x_col, (0, 2, 1, 3))    # (N_TAPS, CIN_PAD, N, HW)
    x_col = x_col.reshape(K_DIM, NHW)             # (32, 512)

    flops = 2 * COUT * K_DIM * NHW
    bytes_accessed = 4 * (K_DIM * NHW + COUT * K_DIM + COUT * NHW)

    out = pl.pallas_call(
        _grouped_conv_kernel,
        out_shape=jax.ShapeDtypeStruct((COUT, NHW), jnp.float32),
        in_specs=[pl.BlockSpec(memory_space=pltpu.MemorySpace.VMEM),
                  pl.BlockSpec(memory_space=pltpu.MemorySpace.VMEM)],
        out_specs=pl.BlockSpec(memory_space=pltpu.MemorySpace.VMEM),
        cost_estimate=pl.CostEstimate(flops=flops, transcendentals=0,
                                      bytes_accessed=bytes_accessed),
    )(x_col, w_stk)

    # (COUT, N*HW) -> (N, COUT, H, W) -> crop to the valid conv window.
    out = jnp.transpose(out.reshape(COUT, N, H, W), (1, 0, 2, 3))
    return out[:, :, :OH, :OW]


if __name__ == "__main__":
    key = jax.random.PRNGKey(0)
    kx, kw = jax.random.split(key)
    x = jax.random.normal(kx, (N, CIN, H, W), dtype=jnp.float32)
    # Deterministic "module parameters" (Conv2d weight, shape (COUT, CIN//G, KH, KW))
    w = jax.random.normal(kw, (COUT, CIN_G, KH, KW), dtype=jnp.float32) * 0.1

    # Weight prep happens once, outside the per-forward path.
    w_stk = jax.block_until_ready(prepare_weight(w))

    out = jax.block_until_ready(grouped_conv2d(x, w_stk))

    # Cross-check against XLA's grouped conv (same semantics as PyTorch Conv2d).
    ref = jax.lax.conv_general_dilated(
        x, w, window_strides=(1, 1), padding="VALID",
        dimension_numbers=("NCHW", "OIHW", "NCHW"),
        feature_group_count=G)
    assert out.shape == (N, COUT, OH, OW)
    assert jnp.max(jnp.abs(out - ref)) < 1e-4, "mismatch vs lax grouped conv"

    print("KERNEL_OK")
</pallas_src>

<mosaic_0001>
module attributes {stable_mosaic.version = 11 : i64} {
  func.func @_grouped_conv_kernel(%arg0: memref<32x512xf32, #tpu.memory_space<vmem>>, %arg1: memref<16x32xf32, #tpu.memory_space<vmem>>, %arg2: memref<16x512xf32, #tpu.memory_space<vmem>>) attributes {dimension_semantics = [], scalar_prefetch = 0 : i64, scratch_operands = 0 : i64, tpu.core_type = #tpu.core_type<tc>} {
    %c0 = arith.constant 0 : index
    %c0_0 = arith.constant 0 : index
    %0 = vector.load %arg1[%c0, %c0_0] : memref<16x32xf32, #tpu.memory_space<vmem>>, vector<16x32xf32>
    %c0_1 = arith.constant 0 : index
    %c0_2 = arith.constant 0 : index
    %1 = vector.load %arg0[%c0_1, %c0_2] : memref<32x512xf32, #tpu.memory_space<vmem>>, vector<32x512xf32>
    %cst = arith.constant dense<0.000000e+00> : vector<16x512xf32>
    %2 = tpu.matmul %0, %1, %cst {dimension_numbers = #tpu.dot_dimension_numbers<[1], [0], [0], [1], [0, 0, 1, 1], [], []>} : vector<16x32xf32>, vector<32x512xf32>, vector<16x512xf32> -> vector<16x512xf32>
    %c0_3 = arith.constant 0 : index
    %c0_4 = arith.constant 0 : index
    %3 = vector.load %arg2[%c0_3, %c0_4] : memref<16x512xf32, #tpu.memory_space<vmem>>, vector<16x512xf32>
    tpu.vector_store %arg2[%c0_3, %c0_4], %2 {strides = array<i32>} : memref<16x512xf32, #tpu.memory_space<vmem>>, vector<16x512xf32>,
    return
  }
}

</mosaic_0001>

<bundles_post_ra>
// kernel: grouped_conv2d.1
= control target key start
LH: loop header
LB: loop body
LE: loop exit
PB: predicated region body
PF: predicated region fallthrough
CT: control target
= control target key end

     0   :  { %vm29_vm0 = vcmask 261120   ;;  %s249_s0 = inlined_call_operand.vmem [shape: f32[32,512], index: 0, kind: input, shape index: {}]   ;;  %s250_s1 = inlined_call_operand.vmem [shape: f32[16,32], index: 1, kind: input, shape index: {}]   ;;  %s251_s2 = inlined_call_operand.vmem [shape: f32[16,512], index: 2, kind: output, shape index: {}]  }
   0x1   :  { %v27_v0 = vld [vmem:[%s249_s0 + $0x70] sm:$0xff]  ;;  %v28_v1 = vld [vmem:[%s249_s0 + $0x78] sm:$0xff]  ;;  %v25_v6 = vld [vmem:[%s249_s0 + $0x60] sm:$0xff] }
   0x2   :  { %v23_v2 = vld [vmem:[%s249_s0 + $0x50] sm:$0xff]  ;;  %94 = vmatpush.msra.mxu2 %v27_v0  ;;  %117 = vmatpush.msra.mxu3 %v28_v1  ;;  %v24_v3 = vld [vmem:[%s249_s0 + $0x58] sm:$0xff]  ;;  %v26_v7 = vld [vmem:[%s249_s0 + $0x68] sm:$0xff] }
   0x3   :  { %v19_v4 = vld [vmem:[%s249_s0 + $0x30] sm:$0xff]  ;;  %v20_v5 = vld [vmem:[%s249_s0 + $0x38] sm:$0xff]  ;;  %v21_v8 = vld [vmem:[%s249_s0 + $0x40] sm:$0xff]  ;;  %48 = vmatpush.msra.mxu0 %v25_v6  ;;  %71 = vmatpush.msra.mxu1 %v26_v7 }
   0x4   :  { %95 = vmatpush.msra.mxu2 %v23_v2  ;;  %118 = vmatpush.msra.mxu3 %v24_v3  ;;  %v15_v9 = vld [vmem:[%s249_s0 + $0x10] sm:$0xff]  ;;  %v16_v10 = vld [vmem:[%s249_s0 + $0x18] sm:$0xff]  ;;  %v22_v11 = vld [vmem:[%s249_s0 + $0x48] sm:$0xff] }
   0x5   :  { %v11_v12 = vld [vmem:[%s250_s1] sm:$0xff]  ;;  %49 = vmatpush.msra.mxu0 %v21_v8  ;;  %72 = vmatpush.msra.mxu1 %v22_v11  ;;  %v18_v14 = vld [vmem:[%s249_s0 + $0x28] sm:$0xff] }
   0x6   :  { %96 = vmatpush.msra.mxu2 %v19_v4  ;;  %119 = vmatpush.msra.mxu3 %v20_v5  ;;  %v17_v13 = vld [vmem:[%s249_s0 + $0x20] sm:$0xff]  ;;  %v14_v16 = vld [vmem:[%s249_s0 + $0x8] sm:$0xff] }
   0x7   :  { %v13_v15 = vld [vmem:[%s249_s0] sm:$0xff]  ;;  %50 = vmatpush.msra.mxu0 %v17_v13  ;;  %73 = vmatpush.msra.mxu1 %v18_v14  ;;  %v12_v17 = vld [vmem:[%s250_s1 + $0x8] sm:$0xff] }
   0x8   :  { %97 = vmatpush.msra.mxu2 %v15_v9  ;;  %120 = vmatpush.msra.mxu3 %v16_v10 }
   0x9   :  { %144 = vmatmul.msk.f32.vlgmr.msra.gmra.mxu2 %vm29_vm0, %v11_v12  ;;  %146 = vmatmul.msk.f32.vlgmr.msra.gmra.mxu3 %vm29_vm0, %v11_v12 }
   0xa   :  { %51 = vmatpush.msra.mxu0 %v13_v15  ;;  %74 = vmatpush.msra.mxu1 %v14_v16 }
   0xb   :  { %140 = vmatmul.msk.f32.vlgmr.msra.gmra.mxu0 %vm29_vm0, %v11_v12  ;;  %142 = vmatmul.msk.f32.vlgmr.msra.gmra.mxu1 %vm29_vm0, %v11_v12 }
  0x11   :  { %145 = vmatmul.msk.f32.gmra.mxu2 %vm29_vm0, %v12_v17  ;;  %147 = vmatmul.msk.f32.gmra.mxu3 %vm29_vm0, %v12_v17 }
  0x13   :  { %141 = vmatmul.msk.f32.gmra.mxu0 %vm29_vm0, %v12_v17  ;;  %143 = vmatmul.msk.f32.gmra.mxu1 %vm29_vm0, %v12_v17 }
  0x88   :  { %v53_v18 = vpop.f32.mrf.mxu0  ;;  %v76_v19 = vpop.f32.mrf.mxu1 }
  0x89   :  { %128 = vst [vmem:[%s251_s2] sm:$0xff] %v53_v18 }
  0x8a   :  { %129 = vst [vmem:[%s251_s2 + $0x8] sm:$0xff] %v76_v19 }
  0x8c   :  { %v99_v20 = vpop.f32.mrf.mxu2  ;;  %v122_v21 = vpop.f32.mrf.mxu3 }
  0x8d   :  { %130 = vst [vmem:[%s251_s2 + $0x10] sm:$0xff] %v99_v20 }
  0x8e   :  { %131 = vst [vmem:[%s251_s2 + $0x18] sm:$0xff] %v122_v21 }
  0x90   :  { %v56_v22 = vpop.f32.mrf.mxu0  ;;  %v79_v23 = vpop.f32.mrf.mxu1 }
  0x91   :  { %132 = vst [vmem:[%s251_s2 + $0x20] sm:$0xff] %v56_v22 }
  0x92   :  { %133 = vst [vmem:[%s251_s2 + $0x28] sm:$0xff] %v79_v23 }
  0x94   :  { %v102_v24 = vpop.f32.mrf.mxu2  ;;  %v125_v25 = vpop.f32.mrf.mxu3 }
  0x95   :  { %134 = vst [vmem:[%s251_s2 + $0x30] sm:$0xff] %v102_v24 }
  0x96   :  { %135 = vst [vmem:[%s251_s2 + $0x38] sm:$0xff] %v125_v25 }

</bundles_post_ra>
